<compile_context>
chip_gen: v5e
topology: v5e:2x2
jax: 0.10.0
libtpu: 0.0.40
codegen_flags: <defaults>
</compile_context>

<pallas_src>
from functools import partial

import jax
import jax.numpy as jnp
from jax.experimental import pallas as pl
from jax.experimental.pallas import tpu as pltpu


HIDDEN_SZ = 20              # module hidden_sz
H_PAD = 32                  # padded hidden so 4*H_PAD == 128 (one vreg lane width)
GATES = 4 * H_PAD           # 128
SLAB_ROWS = 8 + 3 * H_PAD   # 8 misc rows + whh1 + wih2 + whh2 = 104
_MAX_TILE_N = 4096          # batch rows per grid step (review: 2048-8192)
_TILE_QUANTUM = 1024        # batch padding unit for large N (bounds wasted rows)

# row layout of the packed weight slab
_ROW_WIH1 = 0               # layer-1 input weight (input size 1 -> one row)
_ROW_B1 = 1                 # folded layer-1 bias (b_ih1 + b_hh1)
_ROW_B2 = 2                 # folded layer-2 bias (b_ih2 + b_hh2)
_ROW_OUT = 3                # [0:H_PAD] = w_out, [H_PAD] = b_out
_ROW_WHH1 = 8
_ROW_WIH2 = 8 + H_PAD       # wih2 and whh2 are adjacent -> fused K=64 matmul
_ROW_WHH2 = 8 + 2 * H_PAD

# lane (inside the 128-wide state slab) where the scalar output is stashed:
# padding lane HIDDEN_SZ of the h1 block.
OUT_LANE = 2 * H_PAD + HIDDEN_SZ    # 84


# ----------------------------------------------------------------------------- kernel
def _gates_to_hc(gates, c):
    """gates: (T, 128) in gate order [i, f, o, g]."""
    H = H_PAD
    sig = jax.nn.sigmoid(gates[:, : 3 * H])     # one contiguous EUP pass for i,f,o
    i = sig[:, 0:H]
    f = sig[:, H:2 * H]
    o = sig[:, 2 * H:3 * H]
    g = jnp.tanh(gates[:, 3 * H:])
    c_new = f * c + i * g
    h_new = o * jnp.tanh(c_new)
    return h_new, c_new


def optimizer_kernel(inp_ref, state_ref, w_ref, state_out_ref):
    H = H_PAD
    x = inp_ref[...]                                   # (T, 1)
    st = state_ref[...]                                # (T, 128) = [h0|c0|h1|c1]
    h0 = st[:, 0:H]
    c0 = st[:, H:2 * H]
    h1 = st[:, 2 * H:3 * H]
    c1 = st[:, 3 * H:4 * H]

    wih1_row = w_ref[_ROW_WIH1:_ROW_WIH1 + 1, :]       # (1, 128)
    b1 = w_ref[_ROW_B1:_ROW_B1 + 1, :]                 # (1, 128)
    b2 = w_ref[_ROW_B2:_ROW_B2 + 1, :]                 # (1, 128)
    wout_row = w_ref[_ROW_OUT:_ROW_OUT + 1, 0:H]       # (1, H)
    bout = w_ref[_ROW_OUT:_ROW_OUT + 1, H:H + 1]       # (1, 1)
    whh1 = w_ref[_ROW_WHH1:_ROW_WHH1 + H, :]           # (H, 128)
    w2 = w_ref[_ROW_WIH2:_ROW_WIH2 + 2 * H, :]         # (2H, 128) = [wih2; whh2]

    # layer 1: input size 1 -> VPU broadcast multiply instead of a K=1 MXU pass.
    gates1 = (x * wih1_row
              + jnp.dot(h0, whh1, preferred_element_type=jnp.float32)
              + b1)
    h0n, c0n = _gates_to_hc(gates1, c0)

    # layer 2: single fused (T,64)x(64,128) MXU matmul (wih2/whh2 adjacent in slab).
    x2 = jnp.concatenate([h0n, h1], axis=-1)           # (T, 2H)
    gates2 = jnp.dot(x2, w2, preferred_element_type=jnp.float32) + b2
    h1n, c1n = _gates_to_hc(gates2, c1)

    # output Linear as VPU multiply + XLU lane reduction (no N=1 MXU pass).
    out = jnp.sum(h1n * wout_row, axis=-1, keepdims=True) + bout    # (T, 1)

    # Fold the scalar output into the spare padding lane (HIDDEN_SZ) of the h1
    # block so the only store is one lane-dense 128-wide slab (no masked vst,
    # no second skinny output DMA stream).  Junk in that lane on the *next* step
    # is harmless: the corresponding whh2 weight row is zero.
    lane_ids = jax.lax.broadcasted_iota(jnp.int32, (h1n.shape[0], H), 1)
    h1_store = jnp.where(lane_ids == HIDDEN_SZ, out, h1n)

    state_out_ref[...] = jnp.concatenate(
        [h0n, c0n, h1_store, c1n], axis=-1).astype(state_out_ref.dtype)


# ------------------------------------------------------------------- parameter packing
def _round_up(n, m):
    return ((n + m - 1) // m) * m


def _permute_pad_gate_matrix(w, in_dim_pad):
    """PyTorch (4H, In) gate-stacked weight -> (in_dim_pad, 4*H_PAD), order [i,f,o,g]."""
    h = w.shape[0] // 4
    wt = jnp.asarray(w, jnp.float32).T                 # (In, 4H), torch order [i,f,g,o]
    i, f, g, o = jnp.split(wt, 4, axis=-1)
    blocks = [jnp.pad(blk, ((0, in_dim_pad - wt.shape[0]), (0, H_PAD - h)))
              for blk in (i, f, o, g)]                 # reorder -> [i,f,o,g]
    return jnp.concatenate(blocks, axis=-1)


def _permute_pad_gate_vector(b):
    h = b.shape[0] // 4
    i, f, g, o = jnp.split(jnp.asarray(b, jnp.float32), 4)
    return jnp.concatenate([jnp.pad(blk, (0, H_PAD - h)) for blk in (i, f, o, g)])


def prepare_params(params):
    """One-time packing of PyTorch-layout parameters into a single (104, 128) slab.

    Call once outside the step loop (hoists transposes / bias folds off the hot path).
    """
    H = HIDDEN_SZ
    wih1 = _permute_pad_gate_matrix(params["w_ih1"], 1)        # (1, 128)
    whh1 = _permute_pad_gate_matrix(params["w_hh1"], H_PAD)    # (32, 128)
    wih2 = _permute_pad_gate_matrix(params["w_ih2"], H_PAD)    # (32, 128)
    whh2 = _permute_pad_gate_matrix(params["w_hh2"], H_PAD)    # (32, 128)
    b1 = _permute_pad_gate_vector(params["b_ih1"] + params["b_hh1"])   # (128,)
    b2 = _permute_pad_gate_vector(params["b_ih2"] + params["b_hh2"])   # (128,)

    out_row = jnp.zeros((GATES,), jnp.float32)
    out_row = out_row.at[:H].set(jnp.asarray(params["w_out"], jnp.float32).reshape(-1))
    out_row = out_row.at[H_PAD].set(jnp.asarray(params["b_out"], jnp.float32).reshape(-1)[0])

    misc = jnp.zeros((8, GATES), jnp.float32)
    misc = misc.at[_ROW_WIH1].set(wih1[0])
    misc = misc.at[_ROW_B1].set(b1)
    misc = misc.at[_ROW_B2].set(b2)
    misc = misc.at[_ROW_OUT].set(out_row)

    return jnp.concatenate([misc, whh1, wih2, whh2], axis=0)   # (104, 128)


# ---------------------------------------------------------------------- state packing
def pack_state(hidden, cell):
    """((h0,h1),(c0,c1)) each (N,H) -> lane-dense (N_pad, 128) slab [h0|c0|h1|c1].

    Padding lanes (H..H_PAD-1 inside each 32-lane block) and padding rows are
    zero-initialized; the kernel preserves the c-block padding-lane zeros.
    """
    h0, h1 = hidden
    c0, c1 = cell
    n, h = h0.shape
    n_pad = _round_up(n, 8)
    if n_pad > _MAX_TILE_N:
        n_pad = _round_up(n_pad, _TILE_QUANTUM)

    def p(a):
        return jnp.pad(jnp.asarray(a, jnp.float32), ((0, n_pad - n), (0, H_PAD - h)))

    return jnp.concatenate([p(h0), p(c0), p(h1), p(c1)], axis=-1)


def unpack_state(state, n, h=HIDDEN_SZ):
    h0 = state[:n, 0:h]
    c0 = state[:n, H_PAD:H_PAD + h]
    h1 = state[:n, 2 * H_PAD:2 * H_PAD + h]
    c1 = state[:n, 3 * H_PAD:3 * H_PAD + h]
    return (h0, h1), (c0, c1)


def _choose_tile(n_pad):
    """Batch-tile size: big tiles to amortize grid overhead, but keep >=2 grid steps
    when possible so both v7x TensorCores get work ('parallel' axis)."""
    if n_pad <= _MAX_TILE_N:
        if n_pad >= 16 and n_pad % 16 == 0:
            return n_pad // 2       # two grid steps, each a multiple of 8 rows
        return n_pad
    tile = _MAX_TILE_N              # n_pad is a multiple of _TILE_QUANTUM here
    while n_pad % tile:
        tile -= _TILE_QUANTUM
    return tile


# --------------------------------------------------------------------------- hot path
@partial(jax.jit, donate_argnums=(1,))
def optimizer_step(inp, state, weight_slab):
    """One Optimizer.forward step on packed state.

    inp: (N, 1) f32; state: (N_pad, 128) packed [h0|c0|h1|c1] (from pack_state);
    weight_slab: (104, 128) from prepare_params.
    Returns (out (N, 1), new packed state (N_pad, 128)); `state` is donated/updated
    in place.
    """
    n = inp.shape[0]
    n_pad = state.shape[0]
    tile_n = _choose_tile(n_pad)
    grid = (n_pad // tile_n,)

    inp = jnp.asarray(inp, jnp.float32).reshape(n, 1)
    if n != n_pad:
        # Hot-path callers should keep N a multiple of 8 to skip this pad entirely.
        inp = jnp.pad(inp, ((0, n_pad - n), (0, 0)))

    new_state = pl.pallas_call(
        optimizer_kernel,
        out_shape=jax.ShapeDtypeStruct((n_pad, GATES), jnp.float32),
        grid_spec=pltpu.PrefetchScalarGridSpec(
            num_scalar_prefetch=0,
            grid=grid,
            in_specs=[
                pl.BlockSpec((tile_n, 1), lambda i: (i, 0)),
                pl.BlockSpec((tile_n, GATES), lambda i: (i, 0)),
                pl.BlockSpec((SLAB_ROWS, GATES), lambda i: (0, 0)),  # VMEM-resident weights
            ],
            out_specs=pl.BlockSpec((tile_n, GATES), lambda i: (i, 0)),
        ),
        input_output_aliases={1: 0},   # state slab updated in place
        compiler_params=pltpu.CompilerParams(
            dimension_semantics=("parallel",)),
    )(inp, state, weight_slab)

    out = new_state[:n, OUT_LANE:OUT_LANE + 1]
    return out, new_state


def optimizer_forward(inp, hidden, cell, weight_slab):
    """Module-compatible wrapper mirroring Optimizer.forward (preproc=False)."""
    n, h = hidden[0].shape
    state = pack_state(hidden, cell)
    out, new_state = optimizer_step(inp, state, weight_slab)
    (h0, h1), (c0, c1) = unpack_state(new_state, n, h)
    return out, (h0, h1), (c0, c1)


# -------------------------------------------------------------------------- reference
def _reference_forward(inp, hidden, cell, params):
    """Pure-JAX reference matching torch.nn.LSTMCell / Linear semantics."""
    H = hidden[0].shape[1]
    hi = jax.lax.Precision.HIGHEST

    def lstm(x, h, c, w_ih, w_hh, b_ih, b_hh):
        gates = (jnp.dot(x, w_ih.T, precision=hi) + b_ih
                 + jnp.dot(h, w_hh.T, precision=hi) + b_hh)
        i = jax.nn.sigmoid(gates[:, 0 * H:1 * H])
        f = jax.nn.sigmoid(gates[:, 1 * H:2 * H])
        g = jnp.tanh(gates[:, 2 * H:3 * H])
        o = jax.nn.sigmoid(gates[:, 3 * H:4 * H])
        c_new = f * c + i * g
        return o * jnp.tanh(c_new), c_new

    h0, c0 = lstm(inp, hidden[0], cell[0],
                  params["w_ih1"], params["w_hh1"], params["b_ih1"], params["b_hh1"])
    h1, c1 = lstm(h0, hidden[1], cell[1],
                  params["w_ih2"], params["w_hh2"], params["b_ih2"], params["b_hh2"])
    out = jnp.dot(h1, params["w_out"].T, precision=hi) + params["b_out"]
    return out, (h0, h1), (c0, c1)


def _allclose(a, b, tol=1e-4):
    return bool(jnp.allclose(a, b, atol=tol, rtol=tol))


if __name__ == "__main__":
    H = HIDDEN_SZ  # hidden_sz = 20

    key = jax.random.PRNGKey(0)
    keys = jax.random.split(key, 16)
    scale = 1.0 / jnp.sqrt(H)

    params = {
        "w_ih1": jax.random.uniform(keys[0], (4 * H, 1), jnp.float32, -scale, scale),
        "w_hh1": jax.random.uniform(keys[1], (4 * H, H), jnp.float32, -scale, scale),
        "b_ih1": jax.random.uniform(keys[2], (4 * H,), jnp.float32, -scale, scale),
        "b_hh1": jax.random.uniform(keys[3], (4 * H,), jnp.float32, -scale, scale),
        "w_ih2": jax.random.uniform(keys[4], (4 * H, H), jnp.float32, -scale, scale),
        "w_hh2": jax.random.uniform(keys[5], (4 * H, H), jnp.float32, -scale, scale),
        "b_ih2": jax.random.uniform(keys[6], (4 * H,), jnp.float32, -scale, scale),
        "b_hh2": jax.random.uniform(keys[7], (4 * H,), jnp.float32, -scale, scale),
        "w_out": jax.random.uniform(keys[8], (1, H), jnp.float32, -scale, scale),
        "b_out": jax.random.uniform(keys[9], (1,), jnp.float32, -scale, scale),
    }

    # one-time parameter packing (hoisted off the per-step path)
    weight_slab = prepare_params(params)

    # --- single-step, module-compatible check (aligned batch, single tile) ----------
    N = 8
    inp = jax.random.normal(keys[10], (N, 1), jnp.float32)
    hidden = (jnp.zeros((N, H), jnp.float32), jnp.zeros((N, H), jnp.float32))
    cell = (jnp.zeros((N, H), jnp.float32), jnp.zeros((N, H), jnp.float32))

    out, (h0n, h1n), (c0n, c1n) = optimizer_forward(inp, hidden, cell, weight_slab)
    jax.block_until_ready((out, h0n, h1n, c0n, c1n))

    ref_out, (rh0, rh1), (rc0, rc1) = _reference_forward(inp, hidden, cell, params)
    for a, b in zip((out, h0n, h1n, c0n, c1n), (ref_out, rh0, rh1, rc0, rc1)):
        assert _allclose(a, b), "single-step mismatch vs reference"

    # --- multi-step hot path: packed state carried across calls (aliased in place) --
    state = pack_state(hidden, cell)
    r_hidden, r_cell = hidden, cell
    for t in range(3):
        step_inp = jax.random.normal(keys[11 + t], (N, 1), jnp.float32)
        out_k, state = optimizer_step(step_inp, state, weight_slab)
        ref_o, r_hidden, r_cell = _reference_forward(step_inp, r_hidden, r_cell, params)
        assert _allclose(out_k, ref_o), "step output mismatch"
    (h0k, h1k), (c0k, c1k) = unpack_state(state, N, H)
    for a, b in zip((h0k, h1k, c0k, c1k),
                    (r_hidden[0], r_hidden[1], r_cell[0], r_cell[1])):
        assert _allclose(a, b), "carried state mismatch"

    # --- ragged batch: exercises row padding + 2-step 'parallel' grid ----------------
    N2 = 41
    inp2 = jax.random.normal(keys[14], (N2, 1), jnp.float32)
    hidden2 = (jnp.zeros((N2, H), jnp.float32), jnp.zeros((N2, H), jnp.float32))
    cell2 = (jnp.zeros((N2, H), jnp.float32), jnp.zeros((N2, H), jnp.float32))
    out2, (h0b, h1b), (c0b, c1b) = optimizer_forward(inp2, hidden2, cell2, weight_slab)
    jax.block_until_ready(out2)
    ref2, (sh0, sh1), (sc0, sc1) = _reference_forward(inp2, hidden2, cell2, params)
    for a, b in zip((out2, h0b, h1b, c0b, c1b), (ref2, sh0, sh1, sc0, sc1)):
        assert _allclose(a, b), "ragged-batch mismatch vs reference"

    print("KERNEL_OK")
</pallas_src>

<mosaic_0001>
module attributes {stable_mosaic.version = 11 : i64} {
  func.func @optimizer_kernel(%arg0: i32, %arg1: memref<8x1xf32, #tpu.memory_space<vmem>>, %arg2: memref<8x128xf32, #tpu.memory_space<vmem>>, %arg3: memref<104x128xf32, #tpu.memory_space<vmem>>, %arg4: memref<8x128xf32, #tpu.memory_space<vmem>>) attributes {dimension_semantics = [#tpu.dimension_semantics<parallel>], iteration_bounds = array<i64: 1>, scalar_prefetch = 0 : i64, scratch_operands = 0 : i64, tpu.core_type = #tpu.core_type<tc>, window_params = [{transform_indices = @transform_0, window_bounds = array<i64: 8, 1>}, {transform_indices = @transform_1, window_bounds = array<i64: 8, 128>}, {pipeline_mode = #tpu.pipeline_mode<synchronous>, transform_indices = @transform_2, window_bounds = array<i64: 104, 128>}, {transform_indices = @transform_3, window_bounds = array<i64: 8, 128>}]} {
    %c0 = arith.constant 0 : index
    %c0_0 = arith.constant 0 : index
    %0 = vector.load %arg1[%c0, %c0_0] : memref<8x1xf32, #tpu.memory_space<vmem>>, vector<8x1xf32>
    %c0_1 = arith.constant 0 : index
    %c0_2 = arith.constant 0 : index
    %1 = vector.load %arg2[%c0_1, %c0_2] : memref<8x128xf32, #tpu.memory_space<vmem>>, vector<8x128xf32>
    %2 = vector.extract_strided_slice %1 {offsets = [0, 0], sizes = [8, 32], strides = [1, 1]} : vector<8x128xf32> to vector<8x32xf32>
    %3 = vector.extract_strided_slice %1 {offsets = [0, 32], sizes = [8, 32], strides = [1, 1]} : vector<8x128xf32> to vector<8x32xf32>
    %4 = vector.extract_strided_slice %1 {offsets = [0, 64], sizes = [8, 32], strides = [1, 1]} : vector<8x128xf32> to vector<8x32xf32>
    %5 = vector.extract_strided_slice %1 {offsets = [0, 96], sizes = [8, 32], strides = [1, 1]} : vector<8x128xf32> to vector<8x32xf32>
    %c0_3 = arith.constant 0 : index
    %c0_4 = arith.constant 0 : index
    %6 = vector.load %arg3[%c0_3, %c0_4] : memref<104x128xf32, #tpu.memory_space<vmem>>, vector<1x128xf32>
    %c1 = arith.constant 1 : index
    %c0_5 = arith.constant 0 : index
    %7 = vector.load %arg3[%c1, %c0_5] : memref<104x128xf32, #tpu.memory_space<vmem>>, vector<1x128xf32>
    %c2 = arith.constant 2 : index
    %c0_6 = arith.constant 0 : index
    %8 = vector.load %arg3[%c2, %c0_6] : memref<104x128xf32, #tpu.memory_space<vmem>>, vector<1x128xf32>
    %c3 = arith.constant 3 : index
    %c0_7 = arith.constant 0 : index
    %9 = vector.load %arg3[%c3, %c0_7] : memref<104x128xf32, #tpu.memory_space<vmem>>, vector<1x32xf32>
    %c3_8 = arith.constant 3 : index
    %c32 = arith.constant 32 : index
    %10 = vector.load %arg3[%c3_8, %c32] : memref<104x128xf32, #tpu.memory_space<vmem>>, vector<1x1xf32>
    %c8 = arith.constant 8 : index
    %c0_9 = arith.constant 0 : index
    %11 = vector.load %arg3[%c8, %c0_9] : memref<104x128xf32, #tpu.memory_space<vmem>>, vector<32x128xf32>
    %c40 = arith.constant 40 : index
    %c0_10 = arith.constant 0 : index
    %12 = vector.load %arg3[%c40, %c0_10] : memref<104x128xf32, #tpu.memory_space<vmem>>, vector<64x128xf32>
    %13 = vector.broadcast %0 : vector<8x1xf32> to vector<8x128xf32>
    %14 = vector.broadcast %6 : vector<1x128xf32> to vector<8x128xf32>
    %15 = arith.mulf %13, %14 : vector<8x128xf32>
    %cst = arith.constant dense<0.000000e+00> : vector<8x128xf32>
    %16 = tpu.matmul %2, %11, %cst {dimension_numbers = #tpu.dot_dimension_numbers<[1], [0], [0], [1], [0, 0, 1, 1], [], []>} : vector<8x32xf32>, vector<32x128xf32>, vector<8x128xf32> -> vector<8x128xf32>
    %17 = arith.addf %15, %16 : vector<8x128xf32>
    %18 = vector.broadcast %7 : vector<1x128xf32> to vector<8x128xf32>
    %19 = arith.addf %17, %18 : vector<8x128xf32>
    %20 = vector.extract_strided_slice %19 {offsets = [0, 0], sizes = [8, 96], strides = [1, 1]} : vector<8x128xf32> to vector<8x96xf32>
    %21 = arith.negf %20 : vector<8x96xf32>
    %22 = math.exp %21 : vector<8x96xf32>
    %cst_11 = arith.constant 1.000000e+00 : f32
    %23 = vector.broadcast %cst_11 : f32 to vector<8x96xf32>
    %24 = arith.addf %23, %22 : vector<8x96xf32>
    %25 = arith.divf %23, %24 : vector<8x96xf32>
    %26 = vector.extract_strided_slice %25 {offsets = [0, 0], sizes = [8, 32], strides = [1, 1]} : vector<8x96xf32> to vector<8x32xf32>
    %27 = vector.extract_strided_slice %25 {offsets = [0, 32], sizes = [8, 32], strides = [1, 1]} : vector<8x96xf32> to vector<8x32xf32>
    %28 = vector.extract_strided_slice %25 {offsets = [0, 64], sizes = [8, 32], strides = [1, 1]} : vector<8x96xf32> to vector<8x32xf32>
    %29 = vector.extract_strided_slice %19 {offsets = [0, 96], sizes = [8, 32], strides = [1, 1]} : vector<8x128xf32> to vector<8x32xf32>
    %30 = math.tanh %29 : vector<8x32xf32>
    %31 = arith.mulf %27, %3 : vector<8x32xf32>
    %32 = arith.mulf %26, %30 : vector<8x32xf32>
    %33 = arith.addf %31, %32 : vector<8x32xf32>
    %34 = math.tanh %33 : vector<8x32xf32>
    %35 = arith.mulf %28, %34 : vector<8x32xf32>
    %36 = tpu.concatenate %35, %4 in 1 : vector<8x32xf32>, vector<8x32xf32> -> vector<8x64xf32>
    %cst_12 = arith.constant dense<0.000000e+00> : vector<8x128xf32>
    %37 = tpu.matmul %36, %12, %cst_12 {dimension_numbers = #tpu.dot_dimension_numbers<[1], [0], [0], [1], [0, 0, 1, 1], [], []>} : vector<8x64xf32>, vector<64x128xf32>, vector<8x128xf32> -> vector<8x128xf32>
    %38 = vector.broadcast %8 : vector<1x128xf32> to vector<8x128xf32>
    %39 = arith.addf %37, %38 : vector<8x128xf32>
    %40 = vector.extract_strided_slice %39 {offsets = [0, 0], sizes = [8, 96], strides = [1, 1]} : vector<8x128xf32> to vector<8x96xf32>
    %41 = arith.negf %40 : vector<8x96xf32>
    %42 = math.exp %41 : vector<8x96xf32>
    %cst_13 = arith.constant 1.000000e+00 : f32
    %43 = vector.broadcast %cst_13 : f32 to vector<8x96xf32>
    %44 = arith.addf %43, %42 : vector<8x96xf32>
    %45 = arith.divf %43, %44 : vector<8x96xf32>
    %46 = vector.extract_strided_slice %45 {offsets = [0, 0], sizes = [8, 32], strides = [1, 1]} : vector<8x96xf32> to vector<8x32xf32>
    %47 = vector.extract_strided_slice %45 {offsets = [0, 32], sizes = [8, 32], strides = [1, 1]} : vector<8x96xf32> to vector<8x32xf32>
    %48 = vector.extract_strided_slice %45 {offsets = [0, 64], sizes = [8, 32], strides = [1, 1]} : vector<8x96xf32> to vector<8x32xf32>
    %49 = vector.extract_strided_slice %39 {offsets = [0, 96], sizes = [8, 32], strides = [1, 1]} : vector<8x128xf32> to vector<8x32xf32>
    %50 = math.tanh %49 : vector<8x32xf32>
    %51 = arith.mulf %47, %5 : vector<8x32xf32>
    %52 = arith.mulf %46, %50 : vector<8x32xf32>
    %53 = arith.addf %51, %52 : vector<8x32xf32>
    %54 = math.tanh %53 : vector<8x32xf32>
    %55 = arith.mulf %48, %54 : vector<8x32xf32>
    %56 = vector.broadcast %9 : vector<1x32xf32> to vector<8x32xf32>
    %57 = arith.mulf %55, %56 : vector<8x32xf32>
    %cst_14 = arith.constant dense<0.000000e+00> : vector<8xf32>
    %58 = vector.multi_reduction <add>, %57, %cst_14 [1] : vector<8x32xf32> to vector<8xf32>
    %59 = vector.shape_cast %58 : vector<8xf32> to vector<8x1xf32>
    %60 = vector.broadcast %10 : vector<1x1xf32> to vector<8x1xf32>
    %61 = arith.addf %59, %60 : vector<8x1xf32>
    %62 = tpu.iota {dimensions = array<i32: 1>} : vector<8x32xi32>
    %c20_i32 = arith.constant 20 : i32
    %63 = vector.broadcast %c20_i32 : i32 to vector<8x32xi32>
    %64 = arith.cmpi eq, %62, %63 : vector<8x32xi32>
    %65 = vector.shape_cast %61 : vector<8x1xf32> to vector<8x1xf32>
    %66 = vector.broadcast %65 : vector<8x1xf32> to vector<8x32xf32>
    %67 = arith.select %64, %66, %55 : vector<8x32xi1>, vector<8x32xf32>
    %68 = tpu.concatenate %35, %33, %67, %53 in 1 : vector<8x32xf32>, vector<8x32xf32>, vector<8x32xf32>, vector<8x32xf32> -> vector<8x128xf32>
    %c0_15 = arith.constant 0 : index
    %c0_16 = arith.constant 0 : index
    %69 = vector.load %arg4[%c0_15, %c0_16] : memref<8x128xf32, #tpu.memory_space<vmem>>, vector<8x128xf32>
    tpu.vector_store %arg4[%c0_15, %c0_16], %68 {strides = array<i32>} : memref<8x128xf32, #tpu.memory_space<vmem>>, vector<8x128xf32>,
    return
  }
  func.func @transform_0(%arg0: i32) -> (i32, i32) {
    %c0_i32 = arith.constant 0 : i32
    %c0_i32_0 = arith.constant 0 : i32
    return %arg0, %c0_i32 : i32, i32
  }
  func.func @transform_1(%arg0: i32) -> (i32, i32) {
    %c0_i32 = arith.constant 0 : i32
    %c0_i32_0 = arith.constant 0 : i32
    return %arg0, %c0_i32 : i32, i32
  }
  func.func @transform_2(%arg0: i32) -> (i32, i32) {
    %c0_i32 = arith.constant 0 : i32
    %c0_i32_0 = arith.constant 0 : i32
    %c0_i32_1 = arith.constant 0 : i32
    return %c0_i32, %c0_i32_0 : i32, i32
  }
  func.func @transform_3(%arg0: i32) -> (i32, i32) {
    %c0_i32 = arith.constant 0 : i32
    %c0_i32_0 = arith.constant 0 : i32
    return %arg0, %c0_i32 : i32, i32
  }
}

</mosaic_0001>

<bundles_post_ra>
// kernel: optimizer_step.1
= control target key start
LH: loop header
LB: loop body
LE: loop exit
PB: predicated region body
PF: predicated region fallthrough
CT: control target
= control target key end

     0   :  { %8 = vsyncpa [#allocation3], 0  ;;  %s298_s15 = smov [#allocation2]   ;;  %s299_s17 = smov 128   ;;  %s365_s0 = inlined_call_operand.vmem [shape: f32[8,1], index: 0, kind: input, shape index: {}]   ;;  %s366_s1 = inlined_call_operand.vmem [shape: f32[8,128], index: 1, kind: input, shape index: {}, may-alias: {1,3}]   ;;  %s367_s2 = inlined_call_operand.hbm [shape: f32[104,128], index: 2, kind: input, shape index: {}]   ;;  %s368_s3 = inlined_call_operand.vmem [shape: f32[8,128], index: 3, kind: output, shape index: {}, may-alias: {1,3}]  }
   0x1   :  { %s17_s14 = sshll.u32 %s367_s2, 4  ;;  %s19_s16 = sshll.u32 %s298_s15, 4  ;;  %s18_s14 = int_to_ptr.hbm [resolvable:$true] %s17_s14  ;;  %s20_s16 = int_to_ptr.vmem [resolvable:$true] %s19_s16 }
   0x2   :  { %s300_s18 = smov 8  }
   0x3   :  { %25 = dma.hbm_to_vmem [thread:$0]  %s18_s14, 1664, %s20_s16, [#allocation3], %s299_s17, %s299_s17, %s300_s18  }
   0x4   :  { %296 = dma.done.wait [#allocation3], 1664  }
   0x5   :  { %297 = vsyncadd [#allocation3], 4294965632  ;;  %v301_v0 = vmov 0   ;;  %v39_v1 = vld [vmem:[#allocation2 + $0x20] sm:$0xff]  ;;  %v38_v2 = vld [vmem:[#allocation2 + $0x18] sm:$0xff]  ;;  %vm55_vm0 = vcmask 261120  }
   0x6   :  { %249 = vset.pattern.permute.xlu0 %v301_v0  ;;  %71 = vmatpush.msra.mxu0 %v39_v1  ;;  %v30_v3 = vld [vmem:[%s365_s0] sm:$0xff]  ;;  %v37_v4 = vld [vmem:[#allocation2 + $0x10] sm:$0xff]  ;;  %v36_v5 = vld [vmem:[#allocation2 + $0x8] sm:$0xff]  ;;  %s302_s0 = smov 32   ;;  %s304_s22 = smov 96   ;;  %vm128_vm5 = vcmask 523264  }
   0x7   :  { %50 = vperm.xlu0 %249, %v30_v3   ;;  %v31_v6 = vld [vmem:[%s366_s1] sm:$0xff]  ;;  %s303_s1 = smov 64   ;;  %v46_v35 = vld [vmem:[#allocation2 + $0x58] sm:$0xff]  ;;  %v45_v36 = vld [vmem:[#allocation2 + $0x50] sm:$0xff]  ;;  %vm229_vm11 = vcmask 785408  }
   0x8   :  { %72 = vmatpush.msra.mxu0 %v38_v2  ;;  %v252_v7 = vld [vmem:[#allocation2] ss:$0 sm:$0xff]  ;;  %v253_v10 = vld [vmem:[#allocation2 + $0x1] ss:$0 sm:$0xff]  ;;  %v44_v39 = vld [vmem:[#allocation2 + $0x48] sm:$0xff] }
   0x9   :  { %v47_v34 = vld [vmem:[#allocation2 + $0x60] sm:$0xff]  ;;  %v42_v41 = vld [vmem:[#allocation2 + $0x38] sm:$0xff]  ;;  %v41_v42 = vld [vmem:[#allocation2 + $0x30] sm:$0xff] }
   0xa   :  { %73 = vmatpush.msra.mxu0 %v37_v4  ;;  %140 = vmatpush.msra.mxu1 %v47_v34  ;;  %v43_v40 = vld [vmem:[#allocation2 + $0x40] sm:$0xff]  ;;  %v40_v43 = vld [vmem:[#allocation2 + $0x28] sm:$0xff] }
   0xb   :  { %v254_v47 = vld [vmem:[#allocation2 + $0x2] ss:$0 sm:$0xff]  ;;  %v255_v2 = vld [vmem:[#allocation2 + $0x3] ss:$0 sm:$0xff] }
   0xc   :  { %74 = vmatpush.msra.mxu0 %v36_v5  ;;  %141 = vmatpush.msra.mxu1 %v46_v35 }
   0xd   :  { %237 = vmatmul.msk.f32.vlgmr.msra.gmra.mxu0 %vm55_vm0, %v31_v6 }
   0xe   :  { %142 = vmatpush.msra.mxu1 %v45_v36 }
  0x10   :  { %143 = vmatpush.msra.mxu1 %v44_v39 }
  0x12   :  { %144 = vmatpush.msra.mxu1 %v43_v40 }
  0x14   :  { %145 = vmatpush.msra.mxu1 %v42_v41 }
  0x16   :  { %146 = vmatpush.msra.mxu1 %v41_v42 }
  0x18   :  { %147 = vmatpush.msra.mxu1 %v40_v43 }
  0x79   :  { %v51_v8 = vpop.permute.xlu0 %50 }
  0x7a   :  { %v54_v9 = vmul.f32 %v252_v7, %v51_v8 }
  0x8a   :  { %v76_v11 = vpop.f32.mrf.mxu0 }
  0x8b   :  { %v79_v12 = vadd.f32 %v76_v11, %v54_v9 }
  0x8d   :  { %v81_v13 = vadd.f32 %v253_v10, %v79_v12 }
  0x8f   :  { %256 = vtanh.f32 %v81_v13  ;;  %v238_v15 = vmul.f32 -1.442695, %v81_v13 }
  0x91   :  { %258 = vpow2.f32 %v238_v15 }
  0x95   :  { %v257_v14 = vpop.eup %256 }
  0x96   :  { %104 = vrot.lane.b32.xlu0 %v257_v14, %s302_s0  ;;  %v305_v14 = vmov 32  }
  0x97   :  { %v259_v16 = vpop.eup %258  ;;  %250 = vset.pattern.permute.xlu1 %v305_v14  ;;  %251 = vset.pattern.permute.xlu0 %v305_v14 }
  0x98   :  { %v85_v17 = vadd.f32 1.0, %v259_v16 }
  0x9a   :  { %260 = vrcp.f32 %v85_v17  ;;  %v97_v23 = vand.u32 2147483648, %v85_v17  ;;  %vm91_vm2 = vweird.f32 %v85_v17  ;;  %v95_v24 = vand.u32 2147483647, %v85_v17 }
  0x9c   :  { %v98_v26 = vor.u32 1.1754944e-38, %v97_v23  ;;  %vm96_vm4 = vcmp.eq.f32.partialorder %v95_v24, 8.507059e+37 }
  0xa0   :  { %v261_v18 = vpop.eup %260 }
  0xa1   :  { %v87_v19 = vmul.f32 %v261_v18, %v85_v17  ;;  %vm92_vm1 = vweird.f32 %v261_v18  ;;  %v206_v17 = vlaneseq }
  0xa2   :  { %vm93_vm3 = vmor %vm91_vm2, %vm92_vm1 }
  0xa3   :  { %v88_v20 = vsub.f32 1.0, %v87_v19 }
  0xa5   :  { %v89_v21 = vmul.f32 %v261_v18, %v88_v20 }
  0xa7   :  { %v90_v22 = vadd.f32 %v261_v18, %v89_v21 }
  0xa9   :  { %v94_v25 = vsel %vm93_vm3, %v261_v18, %v90_v22  ;;  %v207_v18 = vand.u32 127, %v206_v17 }
  0xaa   :  { %v99_v28 = vsel %vm96_vm4, %v98_v26, %v94_v25 }
  0xab   :  { %v102_v30 = vmul.f32 %v99_v28, %v31_v6  ;;  %vm208_vm10 = vcmp.eq.s32.totalorder %v207_v18, 20 }
 0x108   :  { %v105_v27 = vpop.permute.xlu0 %104 }
 0x109   :  { %v107_v29 = vmul.f32 %v105_v27, %v99_v28 }
 0x10b   :  { %109 = vrot.lane.b32.xlu1 %v107_v29, %s302_s0 }
 0x17d   :  { %v110_v31 = vpop.permute.xlu1 %109 }
 0x17e   :  { %v338_v32 = vadd.f32 %v110_v31, %v102_v30 }
 0x180   :  { %262 = vtanh.f32 %v338_v32 }
 0x186   :  { %v263_v33 = vpop.eup %262 }
 0x187   :  { %115 = vrot.lane.b32.xlu1 %v263_v33, %s302_s0 }
 0x18f   :  { %172 = vrot.lane.b32.xlu1 %v31_v6, %s303_s1 }
 0x197   :  { %194 = vrot.lane.b32.xlu1 %v255_v2, %s303_s1 }
 0x1f9   :  { %v116_v37 = vpop.permute.xlu1 %115 }
 0x1fa   :  { %v118_v38 = vmul.f32 %v116_v37, %v99_v28 }
 0x1fc   :  { %120 = vrot.lane.b32.xlu2 %v118_v38, %s303_s1 }
 0x201   :  { %v173_v3 = vpop.permute.xlu1 %172 }
 0x204   :  { %123 = vrot.lane.b32.xlu2 %v31_v6, %s304_s22 }
 0x209   :  { %v195_v9 = vpop.permute.xlu1 %194 }
 0x256   :  { %v344_v44 = vpop.permute.xlu2 %120 }
 0x257   :  { %v227_v22 = vsel %vm55_vm0, %v344_v44, %v338_v32 }
 0x25e   :  { %v124_v45 = vpop.permute.xlu2 %123 }
 0x25f   :  { %v126_v46 = vsel %vm55_vm0, %v344_v44, %v124_v45 }
 0x260   :  { %239 = vmatmul.msk.f32.vlgmr.msra.gmra.mxu1 %vm128_vm5, %v126_v46 }
 0x2dd   :  { %v149_v48 = vpop.f32.mrf.mxu1 }
 0x2de   :  { %v150_v49 = vadd.f32 %v254_v47, %v149_v48 }
 0x2e0   :  { %264 = vtanh.f32 %v150_v49  ;;  %v240_v51 = vmul.f32 -1.442695, %v150_v49 }
 0x2e2   :  { %266 = vpow2.f32 %v240_v51 }
 0x2e6   :  { %v265_v50 = vpop.eup %264 }
 0x2e7   :  { %177 = vrot.lane.b32.xlu0 %v265_v50, %s302_s0 }
 0x2e8   :  { %v267_v52 = vpop.eup %266 }
 0x2e9   :  { %v155_v53 = vadd.f32 1.0, %v267_v52 }
 0x2eb   :  { %268 = vrcp.f32 %v155_v53  ;;  %v167_v59 = vand.u32 2147483648, %v155_v53  ;;  %vm161_vm7 = vweird.f32 %v155_v53  ;;  %v165_v60 = vand.u32 2147483647, %v155_v53 }
 0x2ed   :  { %v168_v62 = vor.u32 1.1754944e-38, %v167_v59  ;;  %vm166_vm9 = vcmp.eq.f32.partialorder %v165_v60, 8.507059e+37 }
 0x2f1   :  { %v269_v54 = vpop.eup %268 }
 0x2f2   :  { %v157_v55 = vmul.f32 %v269_v54, %v155_v53  ;;  %vm162_vm6 = vweird.f32 %v269_v54 }
 0x2f3   :  { %vm163_vm8 = vmor %vm161_vm7, %vm162_vm6 }
 0x2f4   :  { %v158_v56 = vsub.f32 1.0, %v157_v55 }
 0x2f6   :  { %v159_v57 = vmul.f32 %v269_v54, %v158_v56 }
 0x2f8   :  { %v160_v58 = vadd.f32 %v269_v54, %v159_v57 }
 0x2fa   :  { %v164_v61 = vsel %vm163_vm8, %v269_v54, %v160_v58 }
 0x2fb   :  { %v169_v63 = vsel %vm166_vm9, %v168_v62, %v164_v61 }
 0x2fc   :  { %v175_v4 = vmul.f32 %v173_v3, %v169_v63 }
 0x359   :  { %v178_v0 = vpop.permute.xlu0 %177 }
 0x35a   :  { %v180_v1 = vmul.f32 %v178_v0, %v169_v63 }
 0x35c   :  { %182 = vrot.lane.b32.xlu2 %v180_v1, %s302_s0 }
 0x3b6   :  { %v183_v5 = vpop.permute.xlu2 %182 }
 0x3b7   :  { %v185_v6 = vadd.f32 %v183_v5, %v175_v4 }
 0x3b9   :  { %270 = vtanh.f32 %v185_v6 }
 0x3bf   :  { %v271_v7 = vpop.eup %270 }
 0x3c0   :  { %188 = vrot.lane.b32.xlu0 %v271_v7, %s302_s0 }
 0x432   :  { %v189_v8 = vpop.permute.xlu0 %188 }
 0x433   :  { %v191_v10 = vmul.f32 %v189_v8, %v169_v63 }
 0x435   :  { %v197_v11 = vmul.f32 %v195_v9, %v191_v10 }
 0x437   :  { %199 = vrot.lane.b32.xlu2 %v197_v11, %s303_s1 }
 0x43f   :  { %215 = vrot.lane.b32.xlu2 %v191_v10, %s303_s1 }
 0x447   :  { %224 = vrot.lane.b32.xlu2 %v185_v6, %s303_s1 }
 0x491   :  { %v200_v12 = vpop.permute.xlu2 %199 }
 0x492   :  { %v202_v13 = vsel %vm55_vm0, %v200_v12, 0.0 }
 0x493   :  { %203 = vadd.xlane.f32.xlu0 %v202_v13 }
 0x499   :  { %v216_v19 = vpop.permute.xlu2 %215 }
 0x4a1   :  { %v225_v24 = vpop.permute.xlu2 %224 }
 0x506   :  { %v204_v15 = vpop.xlane.xlu0 %203 }
 0x507   :  { %v205_v16 = vadd.f32 %v255_v2, %v204_v15 }
 0x509   :  { %211 = vperm.xlu1 %250, %v205_v16  }
 0x57b   :  { %v212_v20 = vpop.permute.xlu1 %211 }
 0x57c   :  { %v218_v21 = vsel %vm208_vm10, %v212_v20, %v216_v19 }
 0x57d   :  { %220 = vrot.lane.b32.xlu1 %v218_v21, %s303_s1 }
 0x5ef   :  { %v221_v23 = vpop.permute.xlu1 %220 }
 0x5f0   :  { %v228_v25 = vsel %vm128_vm5, %v227_v22, %v221_v23 }
 0x5f1   :  { %v230_v26 = vsel %vm229_vm11, %v228_v25, %v225_v24 }
 0x5f2   :  { %231 = vst [vmem:[%s368_s3] sm:$0xff] %v230_v26 }
 0x5f3   :  { %236 = vsyncpa [#allocation3], 1 }

</bundles_post_ra>
